<compile_context>
chip_gen: v7x
topology: tpu7x:2x2x1
jax: 0.10.0
libtpu: 0.0.40
codegen_flags: <defaults>
</compile_context>

<pallas_src>
import functools

import jax
import jax.numpy as jnp
from jax.experimental import pallas as pl
from jax.experimental.pallas import tpu as pltpu


def _attn_kernel(q_ref, x_ref, z_ref, attn_ref, *, matmul_dtype):
    # q_ref:    (S, D)      shared learned query parameter
    # x_ref:    (TB, S, D)  a tile of TB batch elements (acts as both K and V)
    # z_ref:    (TB, S, D)
    # attn_ref: (TB, S, S)
    S, D = q_ref.shape
    TB = x_ref.shape[0]

    # Fold both D**-0.25 scalings (on Q and K) into one 1/sqrt(D) applied to
    # the small (S, D) Q tile -- mathematically identical, one less VPU pass
    # over the (TB, S, D) X tile.
    inv_sqrt_d = 1.0 / (float(D) ** 0.5)
    q = q_ref[...].astype(jnp.float32) * inv_sqrt_d            # (S, D)
    x = x_ref[...]                                             # (TB, S, D)

    q_mm = q.astype(matmul_dtype)
    x_mm = x.astype(matmul_dtype)
    q_b = jnp.broadcast_to(q_mm[None], (TB, S, D))             # (TB, S, D)

    # Attention scores (MXU): s[b, i, j] = <q[i], x[b, j]> / sqrt(D)
    s = jnp.einsum("bqd,bkd->bqk", q_b, x_mm,
                   preferred_element_type=jnp.float32)         # (TB, S, S)

    # Numerically stable softmax over keys (matches torch.nn.Softmax(dim=-1)).
    m = jnp.max(s, axis=-1, keepdims=True)
    e = jnp.exp(s - m)
    denom = jnp.sum(e, axis=-1, keepdims=True)
    # reciprocal + multiply instead of divide; approx=True would push it to
    # the (idle) EUP slot at the cost of ~1e-4 relative error.
    p = e * pl.reciprocal(denom, approx=False)                 # (TB, S, S)

    # z = attn @ V (MXU), f32 accumulation.
    z = jnp.einsum("bqk,bkd->bqd", p.astype(matmul_dtype), x_mm,
                   preferred_element_type=jnp.float32)         # (TB, S, D)

    z_ref[...] = z.astype(z_ref.dtype)
    # TODO(synk): for S < 128 the attn_w store is lane-sparse (masked vst);
    # if attention weights are not needed downstream, drop this output (or
    # emit bf16) to halve/remove the dominant S^2 HBM writeback.
    attn_ref[...] = p.astype(attn_ref.dtype)


def _pick_batch_tile(B, S, D, itemsize, vmem_budget_bytes=24 * 1024 * 1024):
    """Largest per-step batch tile whose double-buffered blocks fit the budget."""
    # Per batch element per step: X in + z out + attn out (Q is tiny / shared).
    per_b = (S * D + S * D + S * S) * itemsize
    tb = vmem_budget_bytes // (2 * per_b)        # x2 for double buffering
    tb = int(max(1, min(tb, B, 128)))
    return tb


def per_base_feature_emb_attention(X, Q, *, batch_tile=None,
                                   matmul_dtype=jnp.float32):
    """X: (B, S, D) float32, Q: (S, D) float32 -> (z, attn_w)."""
    B, S, D = X.shape
    assert Q.shape == (S, D)
    out_dtype = X.dtype
    itemsize = jnp.dtype(out_dtype).itemsize

    if batch_tile is None:
        batch_tile = _pick_batch_tile(B, S, D, itemsize)
    TB = int(max(1, min(batch_tile, B)))

    n_steps = -(-B // TB)
    Bp = n_steps * TB
    Xp = X if Bp == B else jnp.pad(X, ((0, Bp - B), (0, 0), (0, 0)))

    kernel = functools.partial(_attn_kernel, matmul_dtype=matmul_dtype)

    cost = pl.CostEstimate(
        flops=4 * Bp * S * S * D,
        transcendentals=Bp * S * S,
        bytes_accessed=(S * D + Bp * (2 * S * D + S * S)) * itemsize,
    )

    z, attn = pl.pallas_call(
        kernel,
        out_shape=(
            jax.ShapeDtypeStruct((Bp, S, D), out_dtype),
            jax.ShapeDtypeStruct((Bp, S, S), out_dtype),
        ),
        grid=(n_steps,),
        in_specs=[
            pl.BlockSpec((S, D), lambda b: (0, 0)),          # Q (shared)
            pl.BlockSpec((TB, S, D), lambda b: (b, 0, 0)),   # X batch tile
        ],
        out_specs=(
            pl.BlockSpec((TB, S, D), lambda b: (b, 0, 0)),
            pl.BlockSpec((TB, S, S), lambda b: (b, 0, 0)),
        ),
        compiler_params=pltpu.CompilerParams(
            dimension_semantics=("parallel",),
            vmem_limit_bytes=48 * 1024 * 1024,   # < 64 MiB physical on v7x
        ),
        cost_estimate=cost,
    )(Q, Xp)

    if Bp != B:
        z = z[:B]
        attn = attn[:B]
    return z, attn


def _reference(X, Q):
    B, S, D = X.shape
    scale = 1.0 / (float(D) ** 0.25)
    q = jnp.broadcast_to(Q[None], (B, S, D)) * scale
    k = X * scale
    attn = jnp.einsum("bsd,btd->bst", q, k)
    attn = jax.nn.softmax(attn, axis=-1)
    z = jnp.einsum("bst,btd->bsd", attn, X)
    return z, attn


if __name__ == "__main__":
    # Small deterministic example: batch=2, seq_len=8, input_dim=32
    B, S, D = 2, 8, 32
    key = jax.random.PRNGKey(0)
    kx, kq = jax.random.split(key)
    X = jax.random.normal(kx, (B, S, D), dtype=jnp.float32)
    # deterministic init of the module parameter Q ~ randn(seq_len, input_dim)
    Q = jax.random.normal(kq, (S, D), dtype=jnp.float32)

    z_ref, attn_ref = _reference(X, Q)

    # f32 MXU-input path (exact-parity path).
    z, attn_w = per_base_feature_emb_attention(X, Q)
    jax.block_until_ready((z, attn_w))
    assert z.shape == (B, S, D) and attn_w.shape == (B, S, S)
    assert jnp.allclose(z, z_ref, atol=1e-5, rtol=1e-5)
    assert jnp.allclose(attn_w, attn_ref, atol=1e-5, rtol=1e-5)

    # bf16 MXU-input path (fast path on v6e/v7x), f32 accumulation.
    z_bf, attn_bf = per_base_feature_emb_attention(
        X, Q, matmul_dtype=jnp.bfloat16)
    jax.block_until_ready((z_bf, attn_bf))
    assert jnp.allclose(z_bf, z_ref, atol=3e-2, rtol=3e-2)
    assert jnp.allclose(attn_bf, attn_ref, atol=3e-2, rtol=3e-2)

    print("KERNEL_OK")
</pallas_src>

<mosaic_0001>
module attributes {stable_mosaic.version = 11 : i64} {
  func.func @_attn_kernel(%arg0: i32, %arg1: memref<8x32xf32, #tpu.memory_space<vmem>>, %arg2: memref<2x8x32xf32, #tpu.memory_space<vmem>>, %arg3: memref<2x8x32xf32, #tpu.memory_space<vmem>>, %arg4: memref<2x8x8xf32, #tpu.memory_space<vmem>>) attributes {dimension_semantics = [#tpu.dimension_semantics<parallel>], iteration_bounds = array<i64: 1>, scalar_prefetch = 0 : i64, scratch_operands = 0 : i64, tpu.core_type = #tpu.core_type<tc>, window_params = [{pipeline_mode = #tpu.pipeline_mode<synchronous>, transform_indices = @transform_0, window_bounds = array<i64: 8, 32>}, {transform_indices = @transform_1, window_bounds = array<i64: 2, 8, 32>}, {transform_indices = @transform_2, window_bounds = array<i64: 2, 8, 32>}, {transform_indices = @transform_3, window_bounds = array<i64: 2, 8, 8>}]} {
    %c0 = arith.constant 0 : index
    %c0_0 = arith.constant 0 : index
    %0 = vector.load %arg1[%c0, %c0_0] : memref<8x32xf32, #tpu.memory_space<vmem>>, vector<8x32xf32>
    %cst = arith.constant 0.176776692 : f32
    %1 = vector.broadcast %cst : f32 to vector<8x32xf32>
    %2 = arith.mulf %0, %1 : vector<8x32xf32>
    %c0_1 = arith.constant 0 : index
    %c0_2 = arith.constant 0 : index
    %c0_3 = arith.constant 0 : index
    %3 = vector.load %arg2[%c0_1, %c0_2, %c0_3] : memref<2x8x32xf32, #tpu.memory_space<vmem>>, vector<2x8x32xf32>
    %4 = vector.shape_cast %2 : vector<8x32xf32> to vector<1x8x32xf32>
    %5 = vector.shape_cast %4 : vector<1x8x32xf32> to vector<1x8x32xf32>
    %6 = vector.broadcast %5 : vector<1x8x32xf32> to vector<2x8x32xf32>
    "tpu.trace_start"() <{level = 10 : i32, message = "bqd,bkd->bqk"}> : () -> ()
    %cst_4 = arith.constant dense<0.000000e+00> : vector<2x8x8xf32>
    %7 = tpu.matmul %6, %3, %cst_4 {dimension_numbers = #tpu.dot_dimension_numbers<[2], [2], [1], [1], [0, 0, 0, 1, 1, 1], [0], [0]>} : vector<2x8x32xf32>, vector<2x8x32xf32>, vector<2x8x8xf32> -> vector<2x8x8xf32>
    "tpu.trace_stop"() : () -> ()
    %cst_5 = arith.constant dense<0xFF800000> : vector<2x8xf32>
    %8 = vector.multi_reduction <maximumf>, %7, %cst_5 [2] : vector<2x8x8xf32> to vector<2x8xf32>
    %9 = vector.shape_cast %8 : vector<2x8xf32> to vector<2x8x1xf32>
    %10 = vector.broadcast %9 : vector<2x8x1xf32> to vector<2x8x8xf32>
    %11 = arith.subf %7, %10 : vector<2x8x8xf32>
    %12 = math.exp %11 : vector<2x8x8xf32>
    %cst_6 = arith.constant dense<0.000000e+00> : vector<2x8xf32>
    %13 = vector.multi_reduction <add>, %12, %cst_6 [2] : vector<2x8x8xf32> to vector<2x8xf32>
    %14 = vector.shape_cast %13 : vector<2x8xf32> to vector<2x8x1xf32>
    %15 = tpu.reciprocal %14 : vector<2x8x1xf32> -> vector<2x8x1xf32>
    %16 = vector.broadcast %15 : vector<2x8x1xf32> to vector<2x8x8xf32>
    %17 = arith.mulf %12, %16 : vector<2x8x8xf32>
    "tpu.trace_start"() <{level = 10 : i32, message = "bqk,bkd->bqd"}> : () -> ()
    %cst_7 = arith.constant dense<0.000000e+00> : vector<2x8x32xf32>
    %18 = tpu.matmul %17, %3, %cst_7 {dimension_numbers = #tpu.dot_dimension_numbers<[2], [1], [1], [2], [0, 0, 0, 1, 1, 2], [0], [0]>} : vector<2x8x8xf32>, vector<2x8x32xf32>, vector<2x8x32xf32> -> vector<2x8x32xf32>
    "tpu.trace_stop"() : () -> ()
    %c0_8 = arith.constant 0 : index
    %c0_9 = arith.constant 0 : index
    %c0_10 = arith.constant 0 : index
    %19 = vector.load %arg3[%c0_8, %c0_9, %c0_10] : memref<2x8x32xf32, #tpu.memory_space<vmem>>, vector<2x8x32xf32>
    tpu.vector_store %arg3[%c0_8, %c0_9, %c0_10], %18 {strides = array<i32>} : memref<2x8x32xf32, #tpu.memory_space<vmem>>, vector<2x8x32xf32>,
    %c0_11 = arith.constant 0 : index
    %c0_12 = arith.constant 0 : index
    %c0_13 = arith.constant 0 : index
    %20 = vector.load %arg4[%c0_11, %c0_12, %c0_13] : memref<2x8x8xf32, #tpu.memory_space<vmem>>, vector<2x8x8xf32>
    tpu.vector_store %arg4[%c0_11, %c0_12, %c0_13], %17 {strides = array<i32>} : memref<2x8x8xf32, #tpu.memory_space<vmem>>, vector<2x8x8xf32>,
    return
  }
  func.func @transform_0(%arg0: i32) -> (i32, i32) {
    %c0_i32 = arith.constant 0 : i32
    %c0_i32_0 = arith.constant 0 : i32
    %c0_i32_1 = arith.constant 0 : i32
    return %c0_i32, %c0_i32_0 : i32, i32
  }
  func.func @transform_1(%arg0: i32) -> (i32, i32, i32) {
    %c0_i32 = arith.constant 0 : i32
    %c0_i32_0 = arith.constant 0 : i32
    %c0_i32_1 = arith.constant 0 : i32
    return %arg0, %c0_i32, %c0_i32_0 : i32, i32, i32
  }
  func.func @transform_2(%arg0: i32) -> (i32, i32, i32) {
    %c0_i32 = arith.constant 0 : i32
    %c0_i32_0 = arith.constant 0 : i32
    %c0_i32_1 = arith.constant 0 : i32
    return %arg0, %c0_i32, %c0_i32_0 : i32, i32, i32
  }
  func.func @transform_3(%arg0: i32) -> (i32, i32, i32) {
    %c0_i32 = arith.constant 0 : i32
    %c0_i32_0 = arith.constant 0 : i32
    %c0_i32_1 = arith.constant 0 : i32
    return %arg0, %c0_i32, %c0_i32_0 : i32, i32, i32
  }
}

</mosaic_0001>

<bundles_post_ra>
// kernel: tpu_custom_call.1
= control target key start
LH: loop header
LB: loop body
LE: loop exit
PB: predicated region body
PF: predicated region fallthrough
CT: control target
= control target key end

     0   :  { %9 = vsyncpa [#allocation3], 0  ;;  %s658_s0 = inlined_call_operand.hbm [shape: f32[8,32], index: 0, kind: input, shape index: {}]   ;;  %s659_s1 = inlined_call_operand.hbm [shape: f32[2,8,32], index: 1, kind: input, shape index: {}]   ;;  %s660_s2 = inlined_call_operand.hbm [shape: f32[2,8,32], index: 2, kind: output, shape index: {0}]   ;;  %s661_s3 = inlined_call_operand.hbm [shape: f32[2,8,8], index: 3, kind: output, shape index: {1}]  }
   0x1   :  { %10 = vsyncpa [#allocation6], 0 }
   0x2   :  { %11 = vsyncpa [#allocation4], 0 }
   0x3   :  { %12 = vsyncpa [#allocation9], 0  ;;  %s548_s12 = smov [#allocation2]   ;;  %s549_s14 = smov [#allocation5]  }
   0x4   :  { %s19_s13 = sshll.u32 %s548_s12, 4  ;;  %s28_s15 = sshll.u32 %s549_s14, 4  ;;  %s20_s13 = int_to_ptr.vmem [resolvable:$true] %s19_s13  ;;  %s576_s15 = int_to_ptr.vmem [resolvable:$true] %s28_s15 }
   0x5   :  { %s452_s18 = scalar_lea.hbm %s658_s0, 128 }
   0x6   :  { %p453_p0 = scmp.ne.s32.totalorder %s658_s0, %s452_s18  ;;  %p456_p1 = scmp.lt.u32.totalorder %s452_s18, %s658_s0 }
   0x8   :  { %p458_p2 = pnand %p456_p1, %p453_p0 }
   0xa   :  { %461 = shalt.err (!%p458_p2)
}
   0xb   :  { %s462_s23 = scalar_lea.vmem %s20_s13, 128  ;;  %p467_p4 = scmp.lt.s32.totalorder %s20_s13, %s20_s13 }
   0xc   :  { %p463_p3 = scmp.ne.s32.totalorder %s20_s13, %s462_s23  ;;  %p468_p5 = scmp.lt.s32.totalorder %s462_s23, %s462_s23 }
   0xe   :  { %p469_p6 = por %p468_p5, %p467_p4 }
  0x10   :  { %p470_p7 = pnand %p469_p6, %p463_p3 }
  0x12   :  { %473 = shalt.err (!%p470_p7)
}
  0x13   :  { %22 = dma.hbm_to_vmem [thread:$0]  %s658_s0, 128, %s20_s13, [#allocation3]  }
  0x14   :  { %s474_s28 = scalar_lea.hbm %s659_s1, 256 }
  0x15   :  { %p475_p8 = scmp.ne.s32.totalorder %s659_s1, %s474_s28  ;;  %p478_p9 = scmp.lt.u32.totalorder %s474_s28, %s659_s1 }
  0x17   :  { %p480_p10 = pnand %p478_p9, %p475_p8 }
  0x19   :  { %483 = shalt.err (!%p480_p10)
}
  0x1a   :  { %s484_s6 = scalar_lea.vmem %s576_s15, 256  ;;  %p489_p12 = scmp.lt.s32.totalorder %s576_s15, %s576_s15 }
  0x1b   :  { %p485_p11 = scmp.ne.s32.totalorder %s576_s15, %s484_s6  ;;  %p490_p13 = scmp.lt.s32.totalorder %s484_s6, %s484_s6 }
  0x1d   :  { %p491_p0 = por %p490_p13, %p489_p12 }
  0x1f   :  { %p492_p1 = pnand %p491_p0, %p485_p11 }
  0x21   :  { %495 = shalt.err (!%p492_p1)
}
  0x22   :  { %s550_s0 = smov 128   ;;  %s551_s7 = smov 8  }
  0x23   :  { %34 = dma.hbm_to_vmem [thread:$0]  %s659_s1, 256, %s576_s15, [#allocation6], %s550_s0, %s550_s0, %s551_s7  }
  0x24   :  { %540 = dma.done.wait [#allocation3], 128  }
  0x25   :  { %541 = vsyncadd [#allocation3], 4294967168 }
  0x26   :  { %542 = dma.done.wait [#allocation6], 256  }
  0x27   :  { %543 = vsyncadd [#allocation6], 4294967040  ;;  %v552_v0 = vmov 0.0   ;;  %vm553_vm0 = vmmov 0   ;;  %vm45_vm1 = vcmask 261120   ;;  %v43_v1 = vld [vmem:[#allocation5] sm:$0xff] }
  0x28   :  { %416 = vmatprep.subr.mxu0 %v552_v0  ;;  %418 = vmatprep.mubr.msk.f32.mxu0 %vm553_vm0, %v552_v0  ;;  %v41_v2 = vld [vmem:[#allocation2] sm:$0xff]  ;;  %v44_v3 = vld [vmem:[#allocation5 + $0x8] sm:$0xff]  ;;  %vm195_vm2 = vcmask 64512   ;;  %s554_s1 = smov [#allocation8]  }
  0x29   :  { %421 = vmatprep.subr.mxu1 %v552_v0  ;;  %423 = vmatprep.mubr.msk.f32.mxu1 %vm553_vm0, %v552_v0  ;;  %v42_v4 = vmul.f32 0.17677669, %v41_v2  ;;  %s385_s10 = sshll.u32 %s554_s1, 4  ;;  %s386_s10 = int_to_ptr.vmem [resolvable:$true] %s385_s10 }
  0x2a   :  { %417 = vmatpush3.xpose.msk.msra.mxu0 %vm45_vm1, %v43_v1  ;;  %422 = vmatpush3.xpose.msk.msra.mxu1 %vm45_vm1, %v44_v3  ;;  %s496_s11 = scalar_lea.vmem %s386_s10, 256  ;;  %p501_p3 = scmp.lt.s32.totalorder %s386_s10, %s386_s10 }
  0x2b   :  { %426 = vmatprep.subr.mxu0 %v552_v0  ;;  %431 = vmatprep.subr.mxu1 %v552_v0  ;;  %p497_p2 = scmp.ne.s32.totalorder %s386_s10, %s496_s11  ;;  %p502_p4 = scmp.lt.s32.totalorder %s496_s11, %s496_s11 }
  0x2d   :  { %419 = vmatmul.mubr.msk.f32.vlgmr.msra.gmra.mrb[0].mxu0 %vm45_vm1, %v42_v4  ;;  %424 = vmatmul.mubr.msk.f32.vlgmr.msra.gmra.mrb[0].mxu1 %vm45_vm1, %v42_v4  ;;  %p503_p5 = por %p502_p4, %p501_p3 }
  0x2e   :  { %427 = vmatpush3.msra.mxu0 %v43_v1  ;;  %428 = vmatprep.mubr.msk.f32.mxu0 %vm553_vm0, %v552_v0 }
  0x2f   :  { %432 = vmatpush3.msra.mxu1 %v44_v3  ;;  %433 = vmatprep.mubr.msk.f32.mxu1 %vm553_vm0, %v552_v0  ;;  %p504_p6 = pnand %p503_p5, %p497_p2 }
 0x100   :  { %v118_v5 = vpop.f32.mrb[0].mxu0  ;;  %v191_v6 = vpop.f32.mrb[0].mxu1 }
 0x101   :  { %v420_v7 = vpop.f32.mrb[1].mxu0  ;;  %v196_v8 = vsel %vm195_vm2, %v118_v5, -inf  ;;  %v425_v9 = vpop.f32.mrb[1].mxu1  ;;  %v199_v10 = vsel %vm195_vm2, %v191_v6, -inf }
 0x102   :  { %197 = vmax.xlane.f32.xlu0 %v196_v8 }
 0x106   :  { %200 = vmax.xlane.f32.xlu0 %v199_v10 }
 0x18f   :  { %v198_v11 = vpop.xlane.xlu0 %197 }
 0x190   :  { %v202_v12 = vsub.f32 %v118_v5, %v198_v11 }
 0x192   :  { %v204_v13 = vmul.f32 1.442695, %v202_v12 }
 0x193   :  { %v201_v14 = vpop.xlane.xlu0 %200 }
 0x194   :  { %444 = vpow2.f32 %v204_v13  ;;  %v203_v15 = vsub.f32 %v191_v6, %v201_v14 }
 0x196   :  { %v206_v16 = vmul.f32 1.442695, %v203_v15 }
 0x198   :  { %446 = vpow2.f32 %v206_v16 }
 0x19e   :  { %v445_v17 = vpop.eup %444 }
 0x19f   :  { %v208_v18 = vsel %vm195_vm2, %v445_v17, 0.0 }
 0x1a0   :  { %209 = vadd.xlane.f32.xlu1 %v208_v18 }
 0x1a2   :  { %v447_v19 = vpop.eup %446 }
 0x1a3   :  { %v211_v20 = vsel %vm195_vm2, %v447_v19, 0.0 }
 0x1a4   :  { %212 = vadd.xlane.f32.xlu1 %v211_v20 }
 0x22d   :  { %v210_v21 = vpop.xlane.xlu1 %209 }
 0x22e   :  { %448 = vrcp.f32 %v210_v21 }
 0x231   :  { %v213_v22 = vpop.xlane.xlu1 %212 }
 0x232   :  { %450 = vrcp.f32 %v213_v22 }
 0x238   :  { %v449_v23 = vpop.eup %448 }
 0x239   :  { %v216_v24 = vmul.f32 %v449_v23, %v445_v17 }
 0x23b   :  { %366 = vst.msk [vmem:[#allocation8] sm:$0xff] %vm195_vm2, %v216_v24  ;;  %429 = vmatmul.mubr.msk.f32.vlgmr.msra.gmra.mrb[2].mxu0 %vm195_vm2, %v216_v24 }
 0x23c   :  { %v451_v25 = vpop.eup %450 }
 0x23d   :  { %v217_v26 = vmul.f32 %v451_v25, %v447_v19 }
 0x23f   :  { %367 = vst.msk [vmem:[#allocation8 + $0x8] sm:$0xff] %vm195_vm2, %v217_v26  ;;  %434 = vmatmul.mubr.msk.f32.vlgmr.msra.gmra.mrb[2].mxu1 %vm195_vm2, %v217_v26 }
 0x240   :  { %507 = shalt.err (!%p504_p6)
}
 0x241   :  { %s508_s14 = scalar_lea.hbm %s661_s3, 256 }
 0x242   :  { %p509_p7 = scmp.ne.s32.totalorder %s661_s3, %s508_s14  ;;  %p512_p8 = scmp.lt.u32.totalorder %s508_s14, %s661_s3 }
 0x244   :  { %p514_p9 = pnand %p512_p8, %p509_p7 }
 0x246   :  { %517 = shalt.err (!%p514_p9)
}
 0x247   :  { %391 = dma.vmem_to_hbm [thread:$0]  %s386_s10, 256, %s661_s3, [#allocation9], %s550_s0, %s550_s0, %s551_s7  }
 0x248   :  { %s555_s21 = smov [#allocation7]  }
 0x249   :  { %s373_s22 = sshll.u32 %s555_s21, 4  ;;  %s374_s22 = int_to_ptr.vmem [resolvable:$true] %s373_s22 }
 0x24a   :  { %s518_s23 = scalar_lea.vmem %s374_s22, 256  ;;  %p523_p11 = scmp.lt.s32.totalorder %s374_s22, %s374_s22 }
 0x24b   :  { %p519_p10 = scmp.ne.s32.totalorder %s374_s22, %s518_s23  ;;  %p524_p12 = scmp.lt.s32.totalorder %s518_s23, %s518_s23 }
 0x24d   :  { %p525_p13 = por %p524_p12, %p523_p11 }
 0x24f   :  { %p526_p0 = pnand %p525_p13, %p519_p10 }
 0x30e   :  { %v287_v27 = vpop.f32.mrb[2].mxu0 }
 0x30f   :  { %364 = vst.msk [vmem:[#allocation7] sm:$0xff] %vm45_vm1, %v287_v27  ;;  %v430_v28 = vpop.f32.mrb[3].mxu0 }
 0x312   :  { %v360_v29 = vpop.f32.mrb[2].mxu1 }
 0x313   :  { %365 = vst.msk [vmem:[#allocation7 + $0x8] sm:$0xff] %vm45_vm1, %v360_v29  ;;  %v435_v30 = vpop.f32.mrb[3].mxu1 }
 0x314   :  { %529 = shalt.err (!%p526_p0)
}
 0x315   :  { %s530_s25 = scalar_lea.hbm %s660_s2, 256 }
 0x316   :  { %p531_p1 = scmp.ne.s32.totalorder %s660_s2, %s530_s25  ;;  %p534_p2 = scmp.lt.u32.totalorder %s530_s25, %s660_s2 }
 0x318   :  { %p536_p3 = pnand %p534_p2, %p531_p1 }
 0x31a   :  { %539 = shalt.err (!%p536_p3)
}
 0x31b   :  { %379 = dma.vmem_to_hbm [thread:$0]  %s374_s22, 256, %s660_s2, [#allocation4], %s550_s0, %s550_s0, %s551_s7  }
 0x31c   :  { %544 = dma.done.wait [#allocation4], 256  }
 0x31d   :  { %545 = vsyncadd [#allocation4], 4294967040 }
 0x31e   :  { %546 = dma.done.wait [#allocation9], 256  }
 0x31f   :  { %547 = vsyncadd [#allocation9], 4294967040 }
 0x320   :  { %398 = vsyncpa [#allocation3], 1 }
 0x321   :  { %399 = vsyncpa [#allocation6], 1 }
 0x322   :  { %400 = vsyncpa [#allocation4], 1 }
 0x323   :  { %401 = vsyncpa [#allocation9], 1 }

</bundles_post_ra>
